<compile_context>
chip_gen: v6e
topology: v6e:2x2x1
jax: 0.10.0
libtpu: 0.0.40
codegen_flags: <defaults>
</compile_context>

<pallas_src>
import functools

import jax
import jax.numpy as jnp
from jax import lax
from jax.experimental import pallas as pl
from jax.experimental.pallas import tpu as pltpu

# Registered buffers from the PyTorch module: (mean, std).
GRI_NORMAL = (8.68, 1.67)
GRI_ABNORMAL = (4.84, 2.08)

BN_EPS = 1e-5
TILE_B = 16384       # batch rows per grid step (sweep 8192..32768 per chip)
CHUNK = 512          # lane sub-chunk processed per inner-loop iteration
N_IN = 6
N_HID1 = 64
N_HID2 = 32
N_EXT = N_HID1 + 2   # 64 hidden rows + 2 GRI z-score rows folded into matmul 1


def _glaucoma_kernel(x_ref, w1_ref, b1_ref, w2_ref, b2_ref, w3_ref, b3_ref,
                     out_ref):
    """One batch tile.

    x_ref   : (TB, 6) -- native batch-major layout (no wrapper transpose / pad).
    out_ref : (2, TB) -- lane-dense packed output: row0 = sigmoid(fc), row1 = gri.
    """
    tb = out_ref.shape[1]
    nchunks = tb // CHUNK                     # tb is always a multiple of CHUNK

    w1 = w1_ref[...]                          # (66, 6)  BN-folded fc1 + GRI z rows
    b1 = b1_ref[...]                          # (66, 1)
    w2 = w2_ref[...]                          # (32, 64) BN-folded fc2
    b2 = b2_ref[...]                          # (32, 1)
    w3 = w3_ref[...]                          # (32, 1)  fc3 weight as a column
    b3 = b3_ref[0, 0]                         # scalar fc3 bias (SMEM)

    def body(c, carry):
        off = pl.multiple_of(c * CHUNK, CHUNK)
        x = x_ref[pl.ds(off, CHUNK), :]                              # (CHUNK, 6)

        # Layer 1 (+ GRI affine rows) as W @ X^T on the MXU (A @ B^T dimension
        # numbers, same pattern as Q.K^T) -- X^T is never materialized.
        h = lax.dot_general(w1, x, (((1,), (1,)), ((), ())),
                            preferred_element_type=jnp.float32) + b1  # (66, CHUNK)
        z_n = h[N_HID1:N_HID1 + 1, :]          # (x5 - mu_n) / sigma_n
        z_a = h[N_HID1 + 1:N_HID1 + 2, :]      # (x5 - mu_a) / sigma_a
        h1 = jnp.maximum(h[0:N_HID1, :], 0.0)  # ReLU (Dropout = identity in eval)

        # Layer 2 (BN folded) -> ReLU.
        h2 = jnp.dot(w2, h1, preferred_element_type=jnp.float32) + b2  # (32, CHUNK)
        h2 = jnp.maximum(h2, 0.0)

        # Layer 3 (32 -> 1) as a sublane reduction (no N=1 MXU pass) -> sigmoid.
        logits = jnp.sum(h2 * w3, axis=0, keepdims=True) + b3          # (1, CHUNK)
        sig = 1.0 / (1.0 + jnp.exp(-logits))

        # GRI Gaussian-likelihood test == squared z-score comparison (exp is
        # strictly monotone; also immune to f32 exp underflow for extreme gri).
        gri = (z_a * z_a < z_n * z_n).astype(jnp.float32)              # (1, CHUNK)

        # Single full (2, CHUNK) store (unmasked vst) instead of two 1-row stores.
        out_ref[:, pl.ds(off, CHUNK)] = jnp.concatenate([sig, gri], axis=0)
        return carry

    lax.fori_loop(0, nchunks, body, 0)


def init_params(key):
    """Deterministic synthetic parameters matching the PyTorch __init__ shapes."""
    k1, k2, k3, k4, k5, k6 = jax.random.split(key, 6)
    # nn.Linear weights are (out, in).
    w1 = jax.random.normal(k1, (64, 6), jnp.float32) * 0.1
    b1 = jax.random.normal(k2, (64,), jnp.float32) * 0.1
    w2 = jax.random.normal(k3, (32, 64), jnp.float32) * 0.1
    b2 = jax.random.normal(k4, (32,), jnp.float32) * 0.1
    w3 = jax.random.normal(k5, (1, 32), jnp.float32) * 0.1
    b3 = jax.random.normal(k6, (1,), jnp.float32) * 0.1
    # BatchNorm1d defaults: gamma=1, beta=0, running_mean=0, running_var=1.
    bn1 = dict(gamma=jnp.ones((64,)), beta=jnp.zeros((64,)),
               mean=jnp.zeros((64,)), var=jnp.ones((64,)))
    bn2 = dict(gamma=jnp.ones((32,)), beta=jnp.zeros((32,)),
               mean=jnp.zeros((32,)), var=jnp.ones((32,)))
    return dict(w1=w1, b1=b1, bn1=bn1, w2=w2, b2=b2, bn2=bn2, w3=w3, b3=b3)


def _fold_bn(w, b, bn):
    """Fold eval-mode BatchNorm1d into the preceding Linear (W kept (out, in))."""
    scale = bn["gamma"] * jax.lax.rsqrt(bn["var"] + BN_EPS)          # (out,)
    shift = bn["beta"] - bn["mean"] * scale                          # (out,)
    w_eff = (w * scale[:, None]).astype(jnp.float32)                 # (out, in)
    b_eff = ((b * scale + shift)[:, None]).astype(jnp.float32)       # (out, 1)
    return w_eff, b_eff


def prepare_params(params):
    """One-time (offline) BN folding + GRI-affine folding + layout prep."""
    w1, b1 = _fold_bn(params["w1"], params["b1"], params["bn1"])     # (64,6), (64,1)
    w2, b2 = _fold_bn(params["w2"], params["b2"], params["bn2"])     # (32,64), (32,1)
    # GRI z-score rows appended to the first matmul:
    #   z_n = (x5 - mu_n)/sigma_n ; z_a = (x5 - mu_a)/sigma_a
    zrows = jnp.zeros((2, N_IN), jnp.float32)
    zrows = zrows.at[0, 5].set(1.0 / GRI_NORMAL[1]).at[1, 5].set(1.0 / GRI_ABNORMAL[1])
    zbias = jnp.array([[-GRI_NORMAL[0] / GRI_NORMAL[1]],
                       [-GRI_ABNORMAL[0] / GRI_ABNORMAL[1]]], jnp.float32)
    w1ext = jnp.concatenate([w1, zrows], axis=0)                     # (66, 6)
    b1ext = jnp.concatenate([b1, zbias], axis=0)                     # (66, 1)
    w3 = params["w3"].reshape(32, 1).astype(jnp.float32)             # column vector
    b3 = params["b3"].reshape(1, 1).astype(jnp.float32)              # SMEM scalar
    # TODO(synk): optional bf16 cast of w1ext/w2 (and x) would shave HBM/MXU time
    # on v6e/v7x but relaxes the 1e-4 parity with the f32 reference; kept f32.
    return dict(w1=w1ext, b1=b1ext, w2=w2, b2=b2, w3=w3, b3=b3)


def _round_up(n, m):
    return ((n + m - 1) // m) * m


@functools.partial(jax.jit, static_argnames=("tile_b",))
def glaucoma_forward(x, folded, tile_b=TILE_B):
    """x: (B, 6) float32 -> (fc_out (B, 1) sigmoid prob, gri_pred (B, 1) {0,1})."""
    B = x.shape[0]
    x = x.astype(jnp.float32)

    # Batch tile: big enough to amortize the ~0.35us/step grid overhead, but
    # (a) tiny batches get one small tile and (b) large batches get >= 2 grid
    # steps so the "parallel" axis can feed both v7x TensorCores.
    tb = min(tile_b, _round_up(max((B + 1) // 2, 1), CHUNK))
    num_tiles = pl.cdiv(B, tb)   # ragged last tile handled by Pallas block clipping

    out = pl.pallas_call(
        _glaucoma_kernel,
        out_shape=jax.ShapeDtypeStruct((2, B), jnp.float32),
        grid=(num_tiles,),
        in_specs=[
            pl.BlockSpec((tb, N_IN), lambda i: (i, 0)),          # x: native layout, streamed
            pl.BlockSpec((N_EXT, N_IN), lambda i: (0, 0)),       # weights: VMEM resident
            pl.BlockSpec((N_EXT, 1), lambda i: (0, 0)),
            pl.BlockSpec((N_HID2, N_HID1), lambda i: (0, 0)),
            pl.BlockSpec((N_HID2, 1), lambda i: (0, 0)),
            pl.BlockSpec((N_HID2, 1), lambda i: (0, 0)),
            pl.BlockSpec((1, 1), lambda i: (0, 0),
                         memory_space=pltpu.MemorySpace.SMEM),   # scalar fc3 bias
        ],
        out_specs=pl.BlockSpec((2, tb), lambda i: (0, i)),       # lane-dense packed output
        compiler_params=pltpu.CompilerParams(
            dimension_semantics=("parallel",),                   # megacore on v7x
            vmem_limit_bytes=(32 * 1024 * 1024 if tb > 2048 else None)),
        cost_estimate=pl.CostEstimate(
            flops=2 * B * (N_IN * N_EXT + N_HID1 * N_HID2),
            transcendentals=B,
            bytes_accessed=4 * B * (N_IN + 2)),
    )(x, folded["w1"], folded["b1"], folded["w2"], folded["b2"],
      folded["w3"], folded["b3"])

    fc_out = out[0][:, None]
    gri_pred = out[1][:, None]
    return fc_out, gri_pred


def _reference_forward(x, params):
    """Pure-JAX eval-mode reference replicating the PyTorch module."""
    def bn(h, p):
        return (h - p["mean"]) * jax.lax.rsqrt(p["var"] + BN_EPS) * p["gamma"] + p["beta"]

    h = x @ params["w1"].T + params["b1"]
    h = jnp.maximum(bn(h, params["bn1"]), 0.0)
    h = h @ params["w2"].T + params["b2"]
    h = jnp.maximum(bn(h, params["bn2"]), 0.0)
    logits = h @ params["w3"].T + params["b3"]
    fc = jax.nn.sigmoid(logits)

    gri = x[:, 5:6]
    normal_p = jnp.exp(-0.5 * ((gri - GRI_NORMAL[0]) / GRI_NORMAL[1]) ** 2)
    abnormal_p = jnp.exp(-0.5 * ((gri - GRI_ABNORMAL[0]) / GRI_ABNORMAL[1]) ** 2)
    return fc, (abnormal_p > normal_p).astype(jnp.float32)


if __name__ == "__main__":
    key = jax.random.PRNGKey(0)
    k_param, k_x1, k_x2, k_x3 = jax.random.split(key, 4)
    params = init_params(k_param)
    folded = prepare_params(params)   # BN + GRI-affine folding hoisted out of the hot path

    # Small single-tile batch, ragged multi-tile batch, and a large batch that
    # exercises the full 16K tile, the multi-chunk inner loop and a ragged tail.
    for B, kx in ((8, k_x1), (1000, k_x2), (40000, k_x3)):
        x = jax.random.normal(kx, (B, 6), jnp.float32) * 2.0 + 6.0  # col 5 ~ GRI score
        fc_out, gri_pred = glaucoma_forward(x, folded)
        jax.block_until_ready((fc_out, gri_pred))

        fc_ref, gri_ref = _reference_forward(x, params)
        assert fc_out.shape == (B, 1) and gri_pred.shape == (B, 1)
        assert bool(jnp.all((fc_out >= 0.0) & (fc_out <= 1.0)))
        assert bool(jnp.all((gri_pred == 0.0) | (gri_pred == 1.0)))
        assert bool(jnp.allclose(fc_out, fc_ref, atol=1e-4, rtol=1e-4))
        # GRI must match everywhere except exactly at a likelihood tie (measure
        # zero), where rounding differences between the kernel's z^2 test and the
        # reference's exp() test may legitimately disagree.
        gri_col = x[:, 5:6]
        normal_p = jnp.exp(-0.5 * ((gri_col - GRI_NORMAL[0]) / GRI_NORMAL[1]) ** 2)
        abnormal_p = jnp.exp(-0.5 * ((gri_col - GRI_ABNORMAL[0]) / GRI_ABNORMAL[1]) ** 2)
        near_tie = jnp.abs(abnormal_p - normal_p) < 1e-6
        assert bool(jnp.all((gri_pred == gri_ref) | near_tie))

    print("KERNEL_OK")
</pallas_src>

<mosaic_0001>
module attributes {stable_mosaic.version = 11 : i64} {
  func.func @_glaucoma_kernel(%arg0: i32, %arg1: memref<512x6xf32, #tpu.memory_space<vmem>>, %arg2: memref<66x6xf32, #tpu.memory_space<vmem>>, %arg3: memref<66x1xf32, #tpu.memory_space<vmem>>, %arg4: memref<32x64xf32, #tpu.memory_space<vmem>>, %arg5: memref<32x1xf32, #tpu.memory_space<vmem>>, %arg6: memref<32x1xf32, #tpu.memory_space<vmem>>, %arg7: memref<1x1xf32, #tpu.memory_space<smem>>, %arg8: memref<2x512xf32, #tpu.memory_space<vmem>>) attributes {dimension_semantics = [#tpu.dimension_semantics<parallel>], iteration_bounds = array<i64: 1>, scalar_prefetch = 0 : i64, scratch_operands = 0 : i64, tpu.core_type = #tpu.core_type<tc>, window_params = [{transform_indices = @transform_0, window_bounds = array<i64: 512, 6>}, {pipeline_mode = #tpu.pipeline_mode<synchronous>, transform_indices = @transform_1, window_bounds = array<i64: 66, 6>}, {pipeline_mode = #tpu.pipeline_mode<synchronous>, transform_indices = @transform_2, window_bounds = array<i64: 66, 1>}, {pipeline_mode = #tpu.pipeline_mode<synchronous>, transform_indices = @transform_3, window_bounds = array<i64: 32, 64>}, {pipeline_mode = #tpu.pipeline_mode<synchronous>, transform_indices = @transform_4, window_bounds = array<i64: 32, 1>}, {pipeline_mode = #tpu.pipeline_mode<synchronous>, transform_indices = @transform_5, window_bounds = array<i64: 32, 1>}, {transform_indices = @transform_6, window_bounds = array<i64: 1, 1>}, {transform_indices = @transform_7, window_bounds = array<i64: 2, 512>}]} {
    %c0 = arith.constant 0 : index
    %c0_0 = arith.constant 0 : index
    %0 = vector.load %arg2[%c0, %c0_0] : memref<66x6xf32, #tpu.memory_space<vmem>>, vector<66x6xf32>
    %c0_1 = arith.constant 0 : index
    %c0_2 = arith.constant 0 : index
    %1 = vector.load %arg3[%c0_1, %c0_2] : memref<66x1xf32, #tpu.memory_space<vmem>>, vector<66x1xf32>
    %c0_3 = arith.constant 0 : index
    %c0_4 = arith.constant 0 : index
    %2 = vector.load %arg4[%c0_3, %c0_4] : memref<32x64xf32, #tpu.memory_space<vmem>>, vector<32x64xf32>
    %c0_5 = arith.constant 0 : index
    %c0_6 = arith.constant 0 : index
    %3 = vector.load %arg5[%c0_5, %c0_6] : memref<32x1xf32, #tpu.memory_space<vmem>>, vector<32x1xf32>
    %c0_7 = arith.constant 0 : index
    %c0_8 = arith.constant 0 : index
    %4 = vector.load %arg6[%c0_7, %c0_8] : memref<32x1xf32, #tpu.memory_space<vmem>>, vector<32x1xf32>
    %c0_9 = arith.constant 0 : index
    %c0_10 = arith.constant 0 : index
    %5 = memref.load %arg7[%c0_9, %c0_10] : memref<1x1xf32, #tpu.memory_space<smem>>
    %c0_i32 = arith.constant 0 : i32
    %c512_i32 = arith.constant 512 : i32
    %6 = arith.muli %c0_i32, %c512_i32 : i32
    %7 = tpu.assume_multiple %6, 512 : i32
    %8 = arith.index_cast %7 : i32 to index
    %c0_11 = arith.constant 0 : index
    %9 = vector.load %arg1[%8, %c0_11] : memref<512x6xf32, #tpu.memory_space<vmem>>, vector<512x6xf32>
    %cst = arith.constant dense<0.000000e+00> : vector<66x512xf32>
    %10 = tpu.matmul %0, %9, %cst {dimension_numbers = #tpu.dot_dimension_numbers<[1], [1], [0], [0], [0, 0, 1, 0], [], []>} : vector<66x6xf32>, vector<512x6xf32>, vector<66x512xf32> -> vector<66x512xf32>
    %11 = vector.broadcast %1 : vector<66x1xf32> to vector<66x512xf32>
    %12 = arith.addf %10, %11 : vector<66x512xf32>
    %13 = vector.extract_strided_slice %12 {offsets = [64, 0], sizes = [1, 512], strides = [1, 1]} : vector<66x512xf32> to vector<1x512xf32>
    %14 = vector.extract_strided_slice %12 {offsets = [65, 0], sizes = [1, 512], strides = [1, 1]} : vector<66x512xf32> to vector<1x512xf32>
    %15 = vector.extract_strided_slice %12 {offsets = [0, 0], sizes = [64, 512], strides = [1, 1]} : vector<66x512xf32> to vector<64x512xf32>
    %cst_12 = arith.constant 0.000000e+00 : f32
    %16 = vector.broadcast %cst_12 : f32 to vector<64x512xf32>
    %17 = arith.maximumf %15, %16 : vector<64x512xf32>
    %cst_13 = arith.constant dense<0.000000e+00> : vector<32x512xf32>
    %18 = tpu.matmul %2, %17, %cst_13 {dimension_numbers = #tpu.dot_dimension_numbers<[1], [0], [0], [1], [0, 0, 1, 1], [], []>} : vector<32x64xf32>, vector<64x512xf32>, vector<32x512xf32> -> vector<32x512xf32>
    %19 = vector.broadcast %3 : vector<32x1xf32> to vector<32x512xf32>
    %20 = arith.addf %18, %19 : vector<32x512xf32>
    %cst_14 = arith.constant 0.000000e+00 : f32
    %21 = vector.broadcast %cst_14 : f32 to vector<32x512xf32>
    %22 = arith.maximumf %20, %21 : vector<32x512xf32>
    %23 = vector.broadcast %4 : vector<32x1xf32> to vector<32x512xf32>
    %24 = arith.mulf %22, %23 : vector<32x512xf32>
    %cst_15 = arith.constant dense<0.000000e+00> : vector<512xf32>
    %25 = vector.multi_reduction <add>, %24, %cst_15 [0] : vector<32x512xf32> to vector<512xf32>
    %26 = vector.shape_cast %25 : vector<512xf32> to vector<1x512xf32>
    %27 = vector.broadcast %5 : f32 to vector<1x512xf32>
    %28 = arith.addf %26, %27 : vector<1x512xf32>
    %cst_16 = arith.constant 0.000000e+00 : f32
    %29 = vector.broadcast %cst_16 : f32 to vector<1x512xf32>
    %30 = arith.subf %29, %28 : vector<1x512xf32>
    %31 = math.exp %30 : vector<1x512xf32>
    %cst_17 = arith.constant 1.000000e+00 : f32
    %32 = vector.broadcast %cst_17 : f32 to vector<1x512xf32>
    %33 = arith.addf %32, %31 : vector<1x512xf32>
    %cst_18 = arith.constant 1.000000e+00 : f32
    %34 = vector.broadcast %cst_18 : f32 to vector<1x512xf32>
    %35 = arith.divf %34, %33 : vector<1x512xf32>
    %36 = arith.mulf %14, %14 : vector<1x512xf32>
    %37 = arith.mulf %13, %13 : vector<1x512xf32>
    %38 = arith.cmpf olt, %36, %37 : vector<1x512xf32>
    %39 = arith.extui %38 : vector<1x512xi1> to vector<1x512xi32>
    %40 = arith.sitofp %39 : vector<1x512xi32> to vector<1x512xf32>
    %41 = tpu.concatenate %35, %40 in 0 : vector<1x512xf32>, vector<1x512xf32> -> vector<2x512xf32>
    %c0_19 = arith.constant 0 : index
    %42 = arith.index_cast %7 : i32 to index
    %43 = vector.load %arg8[%c0_19, %42] : memref<2x512xf32, #tpu.memory_space<vmem>>, vector<2x512xf32>
    tpu.vector_store %arg8[%c0_19, %42], %41 {strides = array<i32>} : memref<2x512xf32, #tpu.memory_space<vmem>>, vector<2x512xf32>,
    %c1_i32 = arith.constant 1 : i32
    return
  }
  func.func @transform_0(%arg0: i32) -> (i32, i32) {
    %c0_i32 = arith.constant 0 : i32
    %c0_i32_0 = arith.constant 0 : i32
    return %arg0, %c0_i32 : i32, i32
  }
  func.func @transform_1(%arg0: i32) -> (i32, i32) {
    %c0_i32 = arith.constant 0 : i32
    %c0_i32_0 = arith.constant 0 : i32
    %c0_i32_1 = arith.constant 0 : i32
    return %c0_i32, %c0_i32_0 : i32, i32
  }
  func.func @transform_2(%arg0: i32) -> (i32, i32) {
    %c0_i32 = arith.constant 0 : i32
    %c0_i32_0 = arith.constant 0 : i32
    %c0_i32_1 = arith.constant 0 : i32
    return %c0_i32, %c0_i32_0 : i32, i32
  }
  func.func @transform_3(%arg0: i32) -> (i32, i32) {
    %c0_i32 = arith.constant 0 : i32
    %c0_i32_0 = arith.constant 0 : i32
    %c0_i32_1 = arith.constant 0 : i32
    return %c0_i32, %c0_i32_0 : i32, i32
  }
  func.func @transform_4(%arg0: i32) -> (i32, i32) {
    %c0_i32 = arith.constant 0 : i32
    %c0_i32_0 = arith.constant 0 : i32
    %c0_i32_1 = arith.constant 0 : i32
    return %c0_i32, %c0_i32_0 : i32, i32
  }
  func.func @transform_5(%arg0: i32) -> (i32, i32) {
    %c0_i32 = arith.constant 0 : i32
    %c0_i32_0 = arith.constant 0 : i32
    %c0_i32_1 = arith.constant 0 : i32
    return %c0_i32, %c0_i32_0 : i32, i32
  }
  func.func @transform_6(%arg0: i32) -> (i32, i32) {
    %c0_i32 = arith.constant 0 : i32
    %c0_i32_0 = arith.constant 0 : i32
    %c0_i32_1 = arith.constant 0 : i32
    return %c0_i32, %c0_i32_0 : i32, i32
  }
  func.func @transform_7(%arg0: i32) -> (i32, i32) {
    %c0_i32 = arith.constant 0 : i32
    %c0_i32_0 = arith.constant 0 : i32
    return %c0_i32, %arg0 : i32, i32
  }
}

</mosaic_0001>

<bundles_post_ra>
// kernel: glaucoma_forward.1
= control target key start
LH: loop header
LB: loop body
LE: loop exit
PB: predicated region body
PF: predicated region fallthrough
CT: control target
= control target key end

     0   :  { %vm167_vm0 = vcmask 48128   ;;  %v1297_v10 = vmov 0   ;;  %vm677_vm1 = vcmask 523264   ;;  %vm1013_vm6 = vcmask 1040384   ;;  %s1805_s0 = inlined_call_operand.vmem [shape: f32[8,6], index: 0, kind: input, shape index: {}]   ;;  %s1806_s1 = inlined_call_operand.vmem [shape: f32[66,6], index: 1, kind: input, shape index: {}]   ;;  %s1807_s2 = inlined_call_operand.vmem [shape: f32[66,1], index: 2, kind: input, shape index: {}]   ;;  %s1808_s3 = inlined_call_operand.vmem [shape: f32[32,64], index: 3, kind: input, shape index: {}]   ;;  %s1809_s4 = inlined_call_operand.vmem [shape: f32[32,1], index: 4, kind: input, shape index: {}]   ;;  %s1810_s5 = inlined_call_operand.vmem [shape: f32[32,1], index: 5, kind: input, shape index: {}]   ;;  %s1811_s6 = inlined_call_operand.<no memory space> [shape: f32[1,1], index: 6, kind: input, shape index: {}]   ;;  %s1812_s7 = inlined_call_operand.vmem [shape: f32[2,8], index: 7, kind: output, shape index: {}]  }
   0x1   :  { %v89_v0 = vld [vmem:[%s1805_s0 + $0xf8] sm:$0xff]  ;;  %v88_v4 = vld [vmem:[%s1805_s0 + $0xf0] sm:$0xff]  ;;  %v87_v8 = vld [vmem:[%s1805_s0 + $0xe8] sm:$0xff]  ;;  %1280 = vset.pattern.permute.xlu1 %v1297_v10  ;;  %1279 = vset.pattern.permute.xlu0 %v1297_v10 }
   0x2   :  { %v121_v1 = vld [vmem:[%s1805_s0 + $0x1f8] sm:$0xff]  ;;  %1176 = vmatprep.subr.msk.mxu0 %vm167_vm0, %v89_v0  ;;  %v120_v5 = vld [vmem:[%s1805_s0 + $0x1f0] sm:$0xff]  ;;  %v119_v9 = vld [vmem:[%s1805_s0 + $0x1e8] sm:$0xff] }
   0x3   :  { %v73_v2 = vld [vmem:[%s1805_s0 + $0x78] sm:$0xff]  ;;  %1226 = vmatprep.subr.msk.mxu1 %vm167_vm0, %v121_v1  ;;  %v72_v6 = vld [vmem:[%s1805_s0 + $0x70] sm:$0xff]  ;;  %v71_v11 = vld [vmem:[%s1805_s0 + $0x68] sm:$0xff] }
   0x4   :  { %v105_v3 = vld [vmem:[%s1805_s0 + $0x178] sm:$0xff]  ;;  %1177 = vmatpush3.xpose.msk.msra.mxu0 %vm167_vm0, %v73_v2  ;;  %v104_v7 = vld [vmem:[%s1805_s0 + $0x170] sm:$0xff]  ;;  %v103_v12 = vld [vmem:[%s1805_s0 + $0x168] sm:$0xff] }
   0x5   :  { %1227 = vmatpush3.xpose.msk.msra.mxu1 %vm167_vm0, %v105_v3  ;;  %1178 = vmatprep.subr.msk.mxu0 %vm167_vm0, %v88_v4  ;;  %v86_v13 = vld [vmem:[%s1805_s0 + $0xe0] sm:$0xff]  ;;  %v85_v17 = vld [vmem:[%s1805_s0 + $0xd8] sm:$0xff]  ;;  %v84_v21 = vld [vmem:[%s1805_s0 + $0xd0] sm:$0xff] }
   0x6   :  { %1228 = vmatprep.subr.msk.mxu1 %vm167_vm0, %v120_v5  ;;  %v118_v14 = vld [vmem:[%s1805_s0 + $0x1e0] sm:$0xff]  ;;  %v117_v18 = vld [vmem:[%s1805_s0 + $0x1d8] sm:$0xff]  ;;  %v116_v22 = vld [vmem:[%s1805_s0 + $0x1d0] sm:$0xff] }
   0x7   :  { %v70_v15 = vld [vmem:[%s1805_s0 + $0x60] sm:$0xff]  ;;  %v69_v19 = vld [vmem:[%s1805_s0 + $0x58] sm:$0xff]  ;;  %v68_v23 = vld [vmem:[%s1805_s0 + $0x50] sm:$0xff] }
   0x8   :  { %1179 = vmatpush3.xpose.msk.msra.mxu0 %vm167_vm0, %v72_v6  ;;  %v102_v16 = vld [vmem:[%s1805_s0 + $0x160] sm:$0xff]  ;;  %v101_v20 = vld [vmem:[%s1805_s0 + $0x158] sm:$0xff]  ;;  %v100_v24 = vld [vmem:[%s1805_s0 + $0x150] sm:$0xff] }
   0x9   :  { %1229 = vmatpush3.xpose.msk.msra.mxu1 %vm167_vm0, %v104_v7  ;;  %1180 = vmatprep.subr.msk.mxu0 %vm167_vm0, %v87_v8  ;;  %v83_v25 = vld [vmem:[%s1805_s0 + $0xc8] sm:$0xff]  ;;  %v1443_v27 = vld [vmem:[%s1806_s1] sm:$0xff]  ;;  %v43_v33 = vld [vmem:[%s1807_s2 + $0x38] sm:$0xff] }
   0xa   :  { %1230 = vmatprep.subr.msk.mxu1 %vm167_vm0, %v119_v9  ;;  %v115_v26 = vld [vmem:[%s1805_s0 + $0x1c8] sm:$0xff]  ;;  %v82_v30 = vld [vmem:[%s1805_s0 + $0xc0] sm:$0xff]  ;;  %1208 = vmatprep.mubr.msk.f32.mxu0 %vm167_vm0, %v1443_v27  ;;  %v42_v35 = vld [vmem:[%s1807_s2 + $0x30] sm:$0xff] }
   0xb   :  { %v67_v28 = vld [vmem:[%s1805_s0 + $0x48] sm:$0xff]  ;;  %v114_v31 = vld [vmem:[%s1805_s0 + $0x1c0] sm:$0xff]  ;;  %1258 = vmatprep.mubr.msk.f32.mxu1 %vm167_vm0, %v1443_v27  ;;  %159 = vperm.xlu0 %1279, %v43_v33   ;;  %v81_v38 = vld [vmem:[%s1805_s0 + $0xb8] sm:$0xff] }
   0xc   :  { %1181 = vmatpush3.xpose.msk.msra.mxu0 %vm167_vm0, %v71_v11  ;;  %v99_v29 = vld [vmem:[%s1805_s0 + $0x148] sm:$0xff]  ;;  %v40_v34 = vld [vmem:[%s1807_s2 + $0x20] sm:$0xff]  ;;  %v113_v39 = vld [vmem:[%s1805_s0 + $0x1b8] sm:$0xff] }
   0xd   :  { %1231 = vmatpush3.xpose.msk.msra.mxu1 %vm167_vm0, %v103_v12  ;;  %1182 = vmatprep.subr.msk.mxu0 %vm167_vm0, %v86_v13  ;;  %v41_v32 = vld [vmem:[%s1807_s2 + $0x28] sm:$0xff]  ;;  %v66_v36 = vld [vmem:[%s1805_s0 + $0x40] sm:$0xff]  ;;  %v38_v40 = vld [vmem:[%s1807_s2 + $0x10] sm:$0xff] }
   0xe   :  { %1232 = vmatprep.subr.msk.mxu1 %vm167_vm0, %v118_v14  ;;  %149 = vperm.xlu1 %1280, %v41_v32   ;;  %v98_v37 = vld [vmem:[%s1805_s0 + $0x140] sm:$0xff]  ;;  %v39_v41 = vld [vmem:[%s1807_s2 + $0x18] sm:$0xff]  ;;  %v80_v44 = vld [vmem:[%s1805_s0 + $0xb0] sm:$0xff] }
   0xf   :  { %154 = vperm.xlu0 %1279, %v42_v35   ;;  %v65_v42 = vld [vmem:[%s1805_s0 + $0x38] sm:$0xff]  ;;  %v112_v45 = vld [vmem:[%s1805_s0 + $0x1b0] sm:$0xff]  ;;  %v36_v46 = vld [vmem:[%s1807_s2] sm:$0xff] }
  0x10   :  { %1183 = vmatpush3.xpose.msk.msra.mxu0 %vm167_vm0, %v70_v15  ;;  %v97_v43 = vld [vmem:[%s1805_s0 + $0x138] sm:$0xff]  ;;  %v37_v47 = vld [vmem:[%s1807_s2 + $0x8] sm:$0xff]  ;;  %v64_v48 = vld [vmem:[%s1805_s0 + $0x30] sm:$0xff] }
  0x11   :  { %1233 = vmatpush3.xpose.msk.msra.mxu1 %vm167_vm0, %v102_v16  ;;  %1184 = vmatprep.subr.msk.mxu0 %vm167_vm0, %v85_v17  ;;  %v96_v49 = vld [vmem:[%s1805_s0 + $0x130] sm:$0xff]  ;;  %v79_v50 = vld [vmem:[%s1805_s0 + $0xa8] sm:$0xff]  ;;  %v49_v52 = vld [vmem:[%s1809_s4] sm:$0xff] }
  0x12   :  { %1234 = vmatprep.subr.msk.mxu1 %vm167_vm0, %v117_v18  ;;  %144 = vperm.xlu1 %1280, %v40_v34   ;;  %v111_v51 = vld [vmem:[%s1805_s0 + $0x1a8] sm:$0xff]  ;;  %v78_v56 = vld [vmem:[%s1805_s0 + $0xa0] sm:$0xff]  ;;  %v51_v58 = vld [vmem:[%s1809_s4 + $0x10] sm:$0xff] }
  0x13   :  { %139 = vperm.xlu0 %1279, %v39_v41   ;;  %v50_v53 = vld [vmem:[%s1809_s4 + $0x8] sm:$0xff]  ;;  %v110_v57 = vld [vmem:[%s1805_s0 + $0x1a0] sm:$0xff]  ;;  %v52_v59 = vld [vmem:[%s1809_s4 + $0x18] sm:$0xff] }
  0x14   :  { %1185 = vmatpush3.xpose.msk.msra.mxu0 %vm167_vm0, %v69_v19  ;;  %v63_v54 = vld [vmem:[%s1805_s0 + $0x28] sm:$0xff]  ;;  %v62_v60 = vld [vmem:[%s1805_s0 + $0x20] sm:$0xff]  ;;  %v77_v62 = vld [vmem:[%s1805_s0 + $0x98] sm:$0xff] }
  0x15   :  { %1235 = vmatpush3.xpose.msk.msra.mxu1 %vm167_vm0, %v101_v20  ;;  %1186 = vmatprep.subr.msk.mxu0 %vm167_vm0, %v84_v21  ;;  %v95_v55 = vld [vmem:[%s1805_s0 + $0x128] sm:$0xff]  ;;  %v94_v61 = vld [vmem:[%s1805_s0 + $0x120] sm:$0xff]  ;;  %v109_v63 = vld [vmem:[%s1805_s0 + $0x198] sm:$0xff] }
  0x16   :  { %1236 = vmatprep.subr.msk.mxu1 %vm167_vm0, %v116_v22  ;;  %134 = vperm.xlu1 %1280, %v38_v40   ;;  %v53_v0 = vld [vmem:[%s1810_s5] sm:$0xff]  ;;  %v54_v1 = vld [vmem:[%s1810_s5 + $0x8] sm:$0xff]  ;;  %v61_v2 = vld [vmem:[%s1805_s0 + $0x18] sm:$0xff] }
  0x17   :  { %129 = vperm.xlu0 %1279, %v37_v47   ;;  %v93_v3 = vld [vmem:[%s1805_s0 + $0x118] sm:$0xff]  ;;  %v76_v4 = vld [vmem:[%s1805_s0 + $0x90] sm:$0xff]  ;;  %v75_v10 = vld [vmem:[%s1805_s0 + $0x88] sm:$0xff] }
  0x18   :  { %1187 = vmatpush3.xpose.msk.msra.mxu0 %vm167_vm0, %v68_v23  ;;  %v108_v5 = vld [vmem:[%s1805_s0 + $0x190] sm:$0xff]  ;;  %v56_v7 = vld [vmem:[%s1810_s5 + $0x18] sm:$0xff]  ;;  %v107_v11 = vld [vmem:[%s1805_s0 + $0x188] sm:$0xff] }
  0x19   :  { %1237 = vmatpush3.xpose.msk.msra.mxu1 %vm167_vm0, %v100_v24  ;;  %1188 = vmatprep.subr.msk.mxu0 %vm167_vm0, %v83_v25  ;;  %v55_v6 = vld [vmem:[%s1810_s5 + $0x10] sm:$0xff]  ;;  %v44_v12 = vld [vmem:[%s1807_s2 + $0x40] sm:$0x3]  ;;  %v59_v13 = vld [vmem:[%s1805_s0 + $0x8] sm:$0xff] }
  0x1a   :  { %1238 = vmatprep.subr.msk.mxu1 %vm167_vm0, %v115_v26  ;;  %124 = vperm.xlu1 %1280, %v36_v46   ;;  %v60_v8 = vld [vmem:[%s1805_s0 + $0x10] sm:$0xff]  ;;  %v91_v14 = vld [vmem:[%s1805_s0 + $0x108] sm:$0xff]  ;;  %v74_v15 = vld [vmem:[%s1805_s0 + $0x80] sm:$0xff] }
  0x1b   :  { %659 = vperm.xlu0 %1279, %v49_v52   ;;  %v92_v9 = vld [vmem:[%s1805_s0 + $0x110] sm:$0xff]  ;;  %v106_v16 = vld [vmem:[%s1805_s0 + $0x180] sm:$0xff]  ;;  %v28_v19 = vld [vmem:[%s1806_s1 + $0x8] sm:$0xff] }
  0x1c   :  { %1189 = vmatpush3.xpose.msk.msra.mxu0 %vm167_vm0, %v67_v28  ;;  %v58_v17 = vld [vmem:[%s1805_s0] sm:$0xff]  ;;  %v29_v20 = vld [vmem:[%s1806_s1 + $0x10] sm:$0xff]  ;;  %v30_v21 = vld [vmem:[%s1806_s1 + $0x18] sm:$0xff] }
  0x1d   :  { %1239 = vmatpush3.xpose.msk.msra.mxu1 %vm167_vm0, %v99_v29  ;;  %1190 = vmatprep.subr.msk.mxu0 %vm167_vm0, %v82_v30  ;;  %v90_v18 = vld [vmem:[%s1805_s0 + $0x100] sm:$0xff]  ;;  %v32_v23 = vld [vmem:[%s1806_s1 + $0x28] sm:$0xff]  ;;  %v33_v24 = vld [vmem:[%s1806_s1 + $0x30] sm:$0xff] }
  0x1e   :  { %1240 = vmatprep.subr.msk.mxu1 %vm167_vm0, %v114_v31  ;;  %664 = vperm.xlu1 %1280, %v50_v53   ;;  %v31_v22 = vld [vmem:[%s1806_s1 + $0x20] sm:$0xff]  ;;  %v34_v25 = vld [vmem:[%s1806_s1 + $0x38] sm:$0xff] }
  0x1f   :  { %669 = vperm.xlu0 %1279, %v51_v58   ;;  %v35_v26 = vld [vmem:[%s1806_s1 + $0x40] sm:$0x3] }
  0x20   :  { %1191 = vmatpush3.xpose.msk.msra.mxu0 %vm167_vm0, %v66_v36 }
  0x21   :  { %1241 = vmatpush3.xpose.msk.msra.mxu1 %vm167_vm0, %v98_v37  ;;  %1192 = vmatprep.subr.msk.mxu0 %vm167_vm0, %v81_v38 }
  0x22   :  { %1242 = vmatprep.subr.msk.mxu1 %vm167_vm0, %v113_v39  ;;  %674 = vperm.xlu1 %1280, %v52_v59  }
  0x23   :  { %886 = vperm.xlu0 %1279, %v53_v0  }
  0x24   :  { %1193 = vmatpush3.xpose.msk.msra.mxu0 %vm167_vm0, %v65_v42 }
  0x25   :  { %1243 = vmatpush3.xpose.msk.msra.mxu1 %vm167_vm0, %v97_v43  ;;  %1194 = vmatprep.subr.msk.mxu0 %vm167_vm0, %v80_v44 }
  0x26   :  { %1244 = vmatprep.subr.msk.mxu1 %vm167_vm0, %v112_v45  ;;  %891 = vperm.xlu1 %1280, %v54_v1  }
  0x27   :  { %896 = vperm.xlu0 %1279, %v55_v6  }
  0x28   :  { %1195 = vmatpush3.xpose.msk.msra.mxu0 %vm167_vm0, %v64_v48 }
  0x29   :  { %1245 = vmatpush3.xpose.msk.msra.mxu1 %vm167_vm0, %v96_v49  ;;  %1196 = vmatprep.subr.msk.mxu0 %vm167_vm0, %v79_v50 }
  0x2a   :  { %1246 = vmatprep.subr.msk.mxu1 %vm167_vm0, %v111_v51  ;;  %901 = vperm.xlu1 %1280, %v56_v7  }
  0x2b   :  { %164 = vperm.xlu0 %1279, %v44_v12  }
  0x2c   :  { %1197 = vmatpush3.xpose.msk.msra.mxu0 %vm167_vm0, %v63_v54 }
  0x2d   :  { %1247 = vmatpush3.xpose.msk.msra.mxu1 %vm167_vm0, %v95_v55  ;;  %1198 = vmatprep.subr.msk.mxu0 %vm167_vm0, %v78_v56 }
  0x2e   :  { %1248 = vmatprep.subr.msk.mxu1 %vm167_vm0, %v110_v57 }
  0x30   :  { %1199 = vmatpush3.xpose.msk.msra.mxu0 %vm167_vm0, %v62_v60 }
  0x31   :  { %1249 = vmatpush3.xpose.msk.msra.mxu1 %vm167_vm0, %v94_v61  ;;  %1200 = vmatprep.subr.msk.mxu0 %vm167_vm0, %v77_v62 }
  0x32   :  { %1250 = vmatprep.subr.msk.mxu1 %vm167_vm0, %v109_v63 }
  0x34   :  { %1201 = vmatpush3.xpose.msk.msra.mxu0 %vm167_vm0, %v61_v2 }
  0x35   :  { %1251 = vmatpush3.xpose.msk.msra.mxu1 %vm167_vm0, %v93_v3  ;;  %1202 = vmatprep.subr.msk.mxu0 %vm167_vm0, %v76_v4 }
  0x36   :  { %1252 = vmatprep.subr.msk.mxu1 %vm167_vm0, %v108_v5 }
  0x38   :  { %1203 = vmatpush3.xpose.msk.msra.mxu0 %vm167_vm0, %v60_v8 }
  0x39   :  { %1253 = vmatpush3.xpose.msk.msra.mxu1 %vm167_vm0, %v92_v9  ;;  %1204 = vmatprep.subr.msk.mxu0 %vm167_vm0, %v75_v10 }
  0x3a   :  { %1254 = vmatprep.subr.msk.mxu1 %vm167_vm0, %v107_v11 }
  0x3c   :  { %1205 = vmatpush3.xpose.msk.msra.mxu0 %vm167_vm0, %v59_v13 }
  0x3d   :  { %1255 = vmatpush3.xpose.msk.msra.mxu1 %vm167_vm0, %v91_v14  ;;  %1206 = vmatprep.subr.msk.mxu0 %vm167_vm0, %v74_v15 }
  0x3e   :  { %1256 = vmatprep.subr.msk.mxu1 %vm167_vm0, %v106_v16 }
  0x40   :  { %1207 = vmatpush3.xpose.msk.msra.mxu0 %vm167_vm0, %v58_v17 }
  0x41   :  { %1257 = vmatpush3.xpose.msk.msra.mxu1 %vm167_vm0, %v90_v18 }
  0x43   :  { %1209 = vmatmul.mubr.msk.f32.vlgmr.msra.gmra.mxu0 %vm167_vm0, %v1443_v27 }
  0x44   :  { %1259 = vmatmul.mubr.msk.f32.vlgmr.msra.gmra.mxu1 %vm167_vm0, %v1443_v27  ;;  %1210 = vmatprep.mubr.msk.f32.mxu0 %vm167_vm0, %v28_v19  ;;  %v1298_v27 = vmov 0.0  }
  0x45   :  { %1260 = vmatprep.mubr.msk.f32.mxu1 %vm167_vm0, %v28_v19 }
  0x47   :  { %1211 = vmatmul.mubr.msk.f32.gmra.mxu0 %vm167_vm0, %v28_v19 }
  0x48   :  { %1261 = vmatmul.mubr.msk.f32.gmra.mxu1 %vm167_vm0, %v28_v19  ;;  %1212 = vmatprep.mubr.msk.f32.mxu0 %vm167_vm0, %v29_v20 }
  0x49   :  { %1262 = vmatprep.mubr.msk.f32.mxu1 %vm167_vm0, %v29_v20 }
  0x4b   :  { %1213 = vmatmul.mubr.msk.f32.gmra.mxu0 %vm167_vm0, %v29_v20 }
  0x4c   :  { %1263 = vmatmul.mubr.msk.f32.gmra.mxu1 %vm167_vm0, %v29_v20  ;;  %1214 = vmatprep.mubr.msk.f32.mxu0 %vm167_vm0, %v30_v21 }
  0x4d   :  { %1264 = vmatprep.mubr.msk.f32.mxu1 %vm167_vm0, %v30_v21 }
  0x4f   :  { %1215 = vmatmul.mubr.msk.f32.gmra.mxu0 %vm167_vm0, %v30_v21 }
  0x50   :  { %1265 = vmatmul.mubr.msk.f32.gmra.mxu1 %vm167_vm0, %v30_v21  ;;  %1216 = vmatprep.mubr.msk.f32.mxu0 %vm167_vm0, %v31_v22 }
  0x51   :  { %1266 = vmatprep.mubr.msk.f32.mxu1 %vm167_vm0, %v31_v22 }
  0x53   :  { %1217 = vmatmul.mubr.msk.f32.gmra.mxu0 %vm167_vm0, %v31_v22 }
  0x54   :  { %1267 = vmatmul.mubr.msk.f32.gmra.mxu1 %vm167_vm0, %v31_v22  ;;  %1218 = vmatprep.mubr.msk.f32.mxu0 %vm167_vm0, %v32_v23 }
  0x55   :  { %1268 = vmatprep.mubr.msk.f32.mxu1 %vm167_vm0, %v32_v23 }
  0x57   :  { %1219 = vmatmul.mubr.msk.f32.gmra.mxu0 %vm167_vm0, %v32_v23 }
  0x58   :  { %1269 = vmatmul.mubr.msk.f32.gmra.mxu1 %vm167_vm0, %v32_v23  ;;  %1220 = vmatprep.mubr.msk.f32.mxu0 %vm167_vm0, %v33_v24 }
  0x59   :  { %1270 = vmatprep.mubr.msk.f32.mxu1 %vm167_vm0, %v33_v24 }
  0x5b   :  { %1221 = vmatmul.mubr.msk.f32.gmra.mxu0 %vm167_vm0, %v33_v24 }
  0x5c   :  { %1271 = vmatmul.mubr.msk.f32.gmra.mxu1 %vm167_vm0, %v33_v24  ;;  %1222 = vmatprep.mubr.msk.f32.mxu0 %vm167_vm0, %v34_v25 }
  0x5d   :  { %1272 = vmatprep.mubr.msk.f32.mxu1 %vm167_vm0, %v34_v25 }
  0x5f   :  { %1223 = vmatmul.mubr.msk.f32.gmra.mxu0 %vm167_vm0, %v34_v25 }
  0x60   :  { %1273 = vmatmul.mubr.msk.f32.gmra.mxu1 %vm167_vm0, %v34_v25  ;;  %1224 = vmatprep.mubr.msk.f32.mxu0 %vm167_vm0, %v35_v26 }
  0x61   :  { %1274 = vmatprep.mubr.msk.f32.mxu1 %vm167_vm0, %v35_v26 }
  0x63   :  { %1225 = vmatmul.mubr.msk.f32.gmra.mxu0 %vm167_vm0, %v35_v26 }
  0x64   :  { %1275 = vmatmul.mubr.msk.f32.gmra.mxu1 %vm167_vm0, %v35_v26  ;;  %754 = vmatprep.mubr.f32.mxu0 %v1298_v27 }
  0x65   :  { %843 = vmatprep.mubr.f32.mxu1 %v1298_v27 }
  0x86   :  { %v160_v50 = vpop.permute.xlu0 %159 }
  0x89   :  { %v150_v53 = vpop.permute.xlu1 %149 }
  0x8a   :  { %v155_v58 = vpop.permute.xlu0 %154 }
  0x8d   :  { %v145_v61 = vpop.permute.xlu1 %144 }
  0x8e   :  { %v140_v7 = vpop.permute.xlu0 %139 }
  0x91   :  { %v135_v15 = vpop.permute.xlu1 %134 }
 0x103   :  { %v1718_v28 = vpop.f32.mrf.mxu0 }
 0x104   :  { %v1720_v29 = vpop.f32.mrf.mxu1 }
 0x105   :  { %v1722_v30 = vpop.f32.mrf.mxu0 }
 0x106   :  { %v1724_v31 = vpop.f32.mrf.mxu1 }
 0x107   :  { %v1726_v32 = vpop.f32.mrf.mxu0 }
 0x108   :  { %v1728_v33 = vpop.f32.mrf.mxu1 }
 0x109   :  { %v1730_v34 = vpop.f32.mrf.mxu0 }
 0x10a   :  { %v1732_v35 = vpop.f32.mrf.mxu1 }
 0x10b   :  { %v1734_v36 = vpop.f32.mrf.mxu0 }
 0x10c   :  { %v1736_v37 = vpop.f32.mrf.mxu1 }
 0x10d   :  { %v1738_v38 = vpop.f32.mrf.mxu0 }
 0x10e   :  { %v1740_v39 = vpop.f32.mrf.mxu1 }
 0x10f   :  { %v471_v40 = vpop.f32.mrf.mxu0 }
 0x110   :  { %v1742_v41 = vpop.f32.mrf.mxu1 }
 0x111   :  { %v473_v42 = vpop.f32.mrf.mxu0 }
 0x112   :  { %v592_v43 = vpop.f32.mrf.mxu1  ;;  %v474_v24 = vadd.f32 %v473_v42, %v140_v7  ;;  %v466_v42 = vadd.f32 %v1734_v36, %v135_v15 }
 0x113   :  { %v477_v44 = vpop.f32.mrf.mxu0 }
 0x114   :  { %v596_v45 = vpop.f32.mrf.mxu1  ;;  %v478_v20 = vadd.f32 %v477_v44, %v145_v61  ;;  %v468_v44 = vadd.f32 %v1738_v38, %v135_v15  ;;  %v638_v38 = vmax.f32 %v474_v24, 0.0 }
 0x115   :  { %v479_v46 = vpop.f32.mrf.mxu0  ;;  %v597_v25 = vadd.f32 %v596_v45, %v145_v61  ;;  %v587_v45 = vadd.f32 %v1740_v39, %v135_v15 }
 0x116   :  { %v598_v47 = vpop.f32.mrf.mxu1  ;;  %v480_v16 = vadd.f32 %v479_v46, %v145_v61 }
 0x117   :  { %v483_v48 = vpop.f32.mrf.mxu0  ;;  %v599_v21 = vadd.f32 %v598_v47, %v145_v61  ;;  %v591_v47 = vadd.f32 %v1742_v41, %v140_v7 }
 0x118   :  { %v602_v49 = vpop.f32.mrf.mxu1  ;;  %v484_v12 = vadd.f32 %v483_v48, %v150_v53  ;;  %v472_v48 = vadd.f32 %v471_v40, %v140_v7 }
 0x119   :  { %v485_v51 = vpop.f32.mrf.mxu0  ;;  %v603_v17 = vadd.f32 %v602_v49, %v150_v53  ;;  %v130_v49 = vpop.permute.xlu0 %129  ;;  %v644_v40 = vmax.f32 %v599_v21, 0.0 }
 0x11a   :  { %v604_v52 = vpop.f32.mrf.mxu1  ;;  %v486_v8 = vadd.f32 %v485_v51, %v150_v53  ;;  %v593_v51 = vadd.f32 %v592_v43, %v140_v7  ;;  %v125_v43 = vpop.permute.xlu1 %124  ;;  %v460_v41 = vadd.f32 %v1726_v32, %v130_v49  ;;  %v637_v36 = vmax.f32 %v472_v48, 0.0  ;;  %v47_v7 = vld [vmem:[%s1808_s3 + $0x10] sm:$0xff] }
 0x11b   :  { %v489_v54 = vpop.f32.mrf.mxu0  ;;  %v605_v13 = vadd.f32 %v604_v52, %v150_v53  ;;  %v645_v52 = vmax.f32 %v484_v12, 0.0  ;;  %v642_v53 = vmax.f32 %v480_v16, 0.0  ;;  %v456_v39 = vadd.f32 %v1722_v30, %v125_v43 }
 0x11c   :  { %v608_v55 = vpop.f32.mrf.mxu1  ;;  %v490_v5 = vadd.f32 %v489_v54, %v155_v58  ;;  %v646_v26 = vmax.f32 %v486_v8, 0.0  ;;  %v647_v54 = vmax.f32 %v603_v17, 0.0  ;;  %v579_v61 = vadd.f32 %v1728_v33, %v130_v49  ;;  %v48_v8 = vld [vmem:[%s1808_s3 + $0x18] sm:$0xff] }
 0x11d   :  { %v491_v56 = vpop.f32.mrf.mxu0  ;;  %v609_v9 = vadd.f32 %v608_v55, %v155_v58  ;;  %v648_v46 = vmax.f32 %v605_v13, 0.0  ;;  %v641_v55 = vmax.f32 %v478_v20, 0.0  ;;  %v636_v32 = vmax.f32 %v587_v45, 0.0 }
 0x11e   :  { %v610_v57 = vpop.f32.mrf.mxu1  ;;  %v492_v1 = vadd.f32 %v491_v56, %v155_v58  ;;  %v649_v22 = vmax.f32 %v490_v5, 0.0  ;;  %v462_v56 = vadd.f32 %v1730_v34, %v130_v49  ;;  %v639_v34 = vmax.f32 %v591_v47, 0.0  ;;  %v665_v12 = vpop.permute.xlu1 %664 }
 0x11f   :  { %v495_v59 = vpop.f32.mrf.mxu0  ;;  %v611_v6 = vadd.f32 %v610_v57, %v155_v58  ;;  %v585_v57 = vadd.f32 %v1736_v37, %v135_v15  ;;  %v643_v58 = vmax.f32 %v597_v25, 0.0  ;;  %v454_v37 = vadd.f32 %v1718_v28, %v125_v43 }
 0x120   :  { %v614_v60 = vpop.f32.mrf.mxu1  ;;  %v496_v62 = vadd.f32 %v495_v59, %v160_v50  ;;  %v650_v18 = vmax.f32 %v492_v1, 0.0  ;;  %v581_v59 = vadd.f32 %v1732_v35, %v130_v49  ;;  %v573_v35 = vadd.f32 %v1720_v29, %v125_v43  ;;  %v45_v29 = vld [vmem:[%s1808_s3] sm:$0xff] }
 0x121   :  { %v497_v63 = vpop.f32.mrf.mxu0  ;;  %v615_v2 = vadd.f32 %v614_v60, %v160_v50  ;;  %v652_v23 = vmax.f32 %v611_v6, 0.0  ;;  %v640_v60 = vmax.f32 %v593_v51, 0.0  ;;  %v630_v1 = vmax.f32 %v462_v56, 0.0  ;;  %v46_v6 = vld [vmem:[%s1808_s3 + $0x8] sm:$0xff] }
 0x122   :  { %v616_v0 = vpop.f32.mrf.mxu1  ;;  %v498_v3 = vadd.f32 %v497_v63, %v160_v50  ;;  %v653_v14 = vmax.f32 %v496_v62, 0.0  ;;  %v634_v62 = vmax.f32 %v468_v44, 0.0  ;;  %v575_v63 = vadd.f32 %v1724_v31, %v125_v43 }
 0x123   :  { %v617_v4 = vadd.f32 %v616_v0, %v160_v50  ;;  %v655_v19 = vmax.f32 %v615_v2, 0.0  ;;  %v651_v50 = vmax.f32 %v609_v9, 0.0  ;;  %v633_v0 = vmax.f32 %v466_v42, 0.0  ;;  %v660_v9 = vpop.permute.xlu0 %659 }
 0x124   :  { %v654_v10 = vmax.f32 %v498_v3, 0.0  ;;  %v635_v2 = vmax.f32 %v585_v57, 0.0  ;;  %v629_v30 = vmax.f32 %v460_v41, 0.0  ;;  %v632_v33 = vmax.f32 %v581_v59, 0.0 }
 0x125   :  { %v656_v11 = vmax.f32 %v617_v4, 0.0  ;;  %v626_v3 = vmax.f32 %v456_v39, 0.0  ;;  %v631_v4 = vmax.f32 %v579_v61, 0.0  ;;  %v625_v28 = vmax.f32 %v454_v37, 0.0 }
 0x126   :  { %706 = vmatprep.subr.mxu0 %v654_v10  ;;  %v628_v31 = vmax.f32 %v575_v63, 0.0  ;;  %v627_v5 = vmax.f32 %v573_v35, 0.0  ;;  %v1783_v10 = vpop.f32.mrf.mxu0 }
 0x127   :  { %795 = vmatprep.subr.mxu1 %v656_v11  ;;  %707 = vmatpush1.msra.mxu0 %v653_v14  ;;  %v1785_v11 = vpop.f32.mrf.mxu1  ;;  %v670_v15 = vpop.permute.xlu0 %669 }
 0x128   :  { %796 = vmatpush1.msra.mxu1 %v655_v19  ;;  %708 = vmatprep.subr.mxu0 %v650_v18  ;;  %v1787_v13 = vpop.f32.mrf.mxu0 }
 0x129   :  { %797 = vmatprep.subr.mxu1 %v652_v23  ;;  %709 = vmatpush1.msra.mxu0 %v649_v22  ;;  %v1789_v14 = vpop.f32.mrf.mxu1  ;;  %v675_v23 = vpop.permute.xlu1 %674 }
 0x12a   :  { %798 = vmatpush1.msra.mxu1 %v651_v50  ;;  %710 = vmatprep.subr.mxu0 %v646_v26 }
 0x12b   :  { %799 = vmatprep.subr.mxu1 %v648_v46  ;;  %711 = vmatpush1.msra.mxu0 %v645_v52  ;;  %v887_v48 = vpop.permute.xlu0 %886 }
 0x12c   :  { %800 = vmatpush1.msra.mxu1 %v647_v54  ;;  %712 = vmatprep.subr.mxu0 %v642_v53 }
 0x12d   :  { %801 = vmatprep.subr.mxu1 %v644_v40  ;;  %713 = vmatpush1.msra.mxu0 %v641_v55 }
 0x12e   :  { %802 = vmatpush1.msra.mxu1 %v643_v58  ;;  %714 = vmatprep.subr.mxu0 %v638_v38  ;;  %v892_v38 = vpop.permute.xlu1 %891 }
 0x12f   :  { %803 = vmatprep.subr.mxu1 %v640_v60  ;;  %715 = vmatpush1.msra.mxu0 %v637_v36  ;;  %v897_v63 = vpop.permute.xlu0 %896 }
 0x130   :  { %804 = vmatpush1.msra.mxu1 %v639_v34  ;;  %716 = vmatprep.subr.mxu0 %v634_v62 }
 0x131   :  { %805 = vmatprep.subr.mxu1 %v636_v32  ;;  %717 = vmatpush1.msra.mxu0 %v633_v0 }
 0x132   :  { %806 = vmatpush1.msra.mxu1 %v635_v2  ;;  %718 = vmatprep.subr.mxu0 %v630_v1 }
 0x133   :  { %807 = vmatprep.subr.mxu1 %v632_v33  ;;  %719 = vmatpush1.msra.mxu0 %v629_v30 }
 0x134   :  { %808 = vmatpush1.msra.mxu1 %v631_v4  ;;  %720 = vmatprep.subr.mxu0 %v626_v3 }
 0x135   :  { %809 = vmatprep.subr.mxu1 %v628_v31  ;;  %721 = vmatpush1.msra.mxu0 %v625_v28 }
 0x136   :  { %810 = vmatpush1.msra.mxu1 %v627_v5  ;;  %1164 = vmatmul.mubr.msk.f32.vlgmr.msra.gmra.mxu0 %vm677_vm1, %v45_v29 }
 0x137   :  { %1168 = vmatmul.mubr.msk.f32.vlgmr.msra.gmra.mxu1 %vm677_vm1, %v45_v29  ;;  %760 = vmatprep.mubr.f32.mxu0 %v1298_v27 }
 0x138   :  { %849 = vmatprep.mubr.f32.mxu1 %v1298_v27 }
 0x13a   :  { %1165 = vmatmul.mubr.msk.f32.gmra.mxu0 %vm677_vm1, %v46_v6 }
 0x13b   :  { %1169 = vmatmul.mubr.msk.f32.gmra.mxu1 %vm677_vm1, %v46_v6  ;;  %766 = vmatprep.mubr.f32.mxu0 %v1298_v27 }
 0x13c   :  { %855 = vmatprep.mubr.f32.mxu1 %v1298_v27 }
 0x13e   :  { %1166 = vmatmul.mubr.msk.f32.gmra.mxu0 %vm677_vm1, %v47_v7 }
 0x13f   :  { %1170 = vmatmul.mubr.msk.f32.gmra.mxu1 %vm677_vm1, %v47_v7  ;;  %772 = vmatprep.mubr.f32.mxu0 %v1298_v27 }
 0x140   :  { %861 = vmatprep.mubr.f32.mxu1 %v1298_v27 }
 0x142   :  { %1167 = vmatmul.mubr.msk.f32.gmra.mxu0 %vm677_vm1, %v48_v8 }
 0x143   :  { %1171 = vmatmul.mubr.msk.f32.gmra.mxu1 %vm677_vm1, %v48_v8 }
 0x1f6   :  { %v756_v16 = vpop.f32.mrf.mxu0 }
 0x1f7   :  { %v845_v17 = vpop.f32.mrf.mxu1  ;;  %v757_v18 = vadd.f32 %v756_v16, %v660_v9 }
 0x1f8   :  { %v846_v19 = vadd.f32 %v845_v17, %v660_v9  ;;  %v758_v20 = vpop.f32.mrf.mxu0 }
 0x1f9   :  { %v759_v21 = vadd.f32 %v758_v20, %v660_v9  ;;  %v847_v22 = vpop.f32.mrf.mxu1  ;;  %v868_v51 = vmax.f32 %v757_v18, 0.0  ;;  %v902_v18 = vpop.permute.xlu1 %901 }
 0x1fa   :  { %v848_v24 = vadd.f32 %v847_v22, %v660_v9  ;;  %v762_v25 = vpop.f32.mrf.mxu0  ;;  %v870_v52 = vmax.f32 %v846_v19, 0.0 }
 0x1fb   :  { %v763_v26 = vadd.f32 %v762_v25, %v665_v12  ;;  %v851_v50 = vpop.f32.mrf.mxu1  ;;  %v869_v44 = vmax.f32 %v759_v21, 0.0  ;;  %v904_v58 = vmul.f32 %v887_v48, %v868_v51 }
 0x1fc   :  { %v852_v46 = vadd.f32 %v851_v50, %v665_v12  ;;  %v764_v49 = vpop.f32.mrf.mxu0  ;;  %v871_v42 = vmax.f32 %v848_v24, 0.0  ;;  %v906_v41 = vmul.f32 %v887_v48, %v870_v52 }
 0x1fd   :  { %v872_v47 = vmax.f32 %v763_v26, 0.0  ;;  %v765_v53 = vadd.f32 %v764_v49, %v665_v12  ;;  %v853_v54 = vpop.f32.mrf.mxu1  ;;  %v905_v39 = vmul.f32 %v887_v48, %v869_v44 }
 0x1fe   :  { %v874_v45 = vmax.f32 %v852_v46, 0.0  ;;  %v854_v55 = vadd.f32 %v853_v54, %v665_v12  ;;  %v768_v40 = vpop.f32.mrf.mxu0  ;;  %v907_v0 = vmul.f32 %v887_v48, %v871_v42 }
 0x1ff   :  { %v873_v43 = vmax.f32 %v765_v53, 0.0  ;;  %v769_v56 = vadd.f32 %v768_v40, %v670_v15  ;;  %v857_v57 = vpop.f32.mrf.mxu1  ;;  %v908_v61 = vmul.f32 %v892_v38, %v872_v47 }
 0x200   :  { %v875_v59 = vmax.f32 %v854_v55, 0.0  ;;  %v858_v36 = vadd.f32 %v857_v57, %v670_v15  ;;  %v770_v60 = vpop.f32.mrf.mxu0  ;;  %v910_v32 = vmul.f32 %v892_v38, %v874_v45 }
 0x201   :  { %v876_v62 = vmax.f32 %v769_v56, 0.0  ;;  %v771_v34 = vadd.f32 %v770_v60, %v670_v15  ;;  %v859_v37 = vpop.f32.mrf.mxu1  ;;  %v909_v30 = vmul.f32 %v892_v38, %v873_v43  ;;  %v920_v8 = vadd.f32 %v908_v61, %v904_v58 }
 0x202   :  { %v878_v35 = vmax.f32 %v858_v36, 0.0  ;;  %v860_v1 = vadd.f32 %v859_v37, %v670_v15  ;;  %v774_v2 = vpop.f32.mrf.mxu0  ;;  %v911_v31 = vmul.f32 %v892_v38, %v875_v59  ;;  %v938_v19 = vadd.f32 %v910_v32, %v906_v41 }
 0x203   :  { %v912_v33 = vmul.f32 %v897_v63, %v876_v62  ;;  %v877_v3 = vmax.f32 %v771_v34, 0.0  ;;  %v775_v4 = vadd.f32 %v774_v2, %v675_v23  ;;  %v863_v28 = vpop.f32.mrf.mxu1  ;;  %v929_v22 = vadd.f32 %v909_v30, %v905_v39 }
 0x204   :  { %v914_v29 = vmul.f32 %v897_v63, %v878_v35  ;;  %v879_v5 = vmax.f32 %v860_v1, 0.0  ;;  %v864_v6 = vadd.f32 %v863_v28, %v675_v23  ;;  %v776_v7 = vpop.f32.mrf.mxu0  ;;  %v947_v50 = vadd.f32 %v911_v31, %v907_v0 }
 0x205   :  { %v913_v9 = vmul.f32 %v897_v63, %v877_v3  ;;  %v880_v12 = vmax.f32 %v775_v4, 0.0  ;;  %v777_v16 = vadd.f32 %v776_v7, %v675_v23  ;;  %v865_v17 = vpop.f32.mrf.mxu1  ;;  %v921_v24 = vadd.f32 %v920_v8, %v912_v33 }
 0x206   :  { %v915_v20 = vmul.f32 %v897_v63, %v879_v5  ;;  %v882_v15 = vmax.f32 %v864_v6, 0.0  ;;  %v866_v21 = vadd.f32 %v865_v17, %v675_v23  ;;  %v939_v48 = vadd.f32 %v938_v19, %v914_v29 }
 0x207   :  { %v916_v25 = vmul.f32 %v902_v18, %v880_v12  ;;  %v881_v26 = vmax.f32 %v777_v16, 0.0  ;;  %v930_v46 = vadd.f32 %v929_v22, %v913_v9  ;;  %v956_v37 = vstv %s1811_s6 }
 0x208   :  { %v918_v51 = vmul.f32 %v902_v18, %v882_v15  ;;  %v883_v52 = vmax.f32 %v866_v21, 0.0  ;;  %v948_v47 = vadd.f32 %v947_v50, %v915_v20  ;;  %v165_v15 = vpop.permute.xlu0 %164 }
 0x209   :  { %v922_v49 = vadd.f32 %v921_v24, %v916_v25  ;;  %v917_v44 = vmul.f32 %v902_v18, %v881_v26  ;;  %v502_v24 = vadd.f32 %v1783_v10, %v165_v15  ;;  %v504_v25 = vadd.f32 %v1787_v13, %v165_v15 }
 0x20a   :  { %v940_v53 = vadd.f32 %v939_v48, %v918_v51  ;;  %v919_v54 = vmul.f32 %v902_v18, %v883_v52  ;;  %v621_v50 = vadd.f32 %v1785_v11, %v165_v15  ;;  %v623_v48 = vadd.f32 %v1789_v14, %v165_v15 }
 0x20b   :  { %v923_v42 = vrot.slane %v922_v49, 4  ;;  %v931_v45 = vadd.f32 %v930_v46, %v917_v44  ;;  %v985_v52 = vmul.f32 %v502_v24, %v502_v24  ;;  %v986_v46 = vmul.f32 %v504_v25, %v504_v25 }
 0x20c   :  { %v941_v55 = vrot.slane %v940_v53, 4  ;;  %v949_v40 = vadd.f32 %v948_v47, %v919_v54  ;;  %v988_v44 = vmul.f32 %v623_v48, %v623_v48  ;;  %v1299_v47 = vmov 1983009808  }
 0x20d   :  { %v924_v43 = vadd.f32 %v923_v42, %v922_v49  ;;  %v932_v23 = vrot.slane %v931_v45, 4  ;;  %v987_v49 = vmul.f32 %v621_v50, %v621_v50  ;;  %v1027_v54 = vlaneseq }
 0x20e   :  { %v942_v56 = vadd.f32 %v941_v55, %v940_v53  ;;  %v950_v57 = vrot.slane %v949_v40, 4  ;;  %v1025_v53 = vunpack.c.l.s4 %v1299_v47  ;;  %v993_v10 = vrot.slane %v985_v52, 7 }
 0x20f   :  { %v925_v38 = vrot.slane %v924_v43, 2  ;;  %v933_v58 = vadd.f32 %v932_v23, %v931_v45  ;;  %v994_v42 = vrot.slane %v986_v46, 7  ;;  %v995_v13 = vrot.slane %v987_v49, 7 }
 0x210   :  { %v943_v41 = vrot.slane %v942_v56, 2  ;;  %v951_v59 = vadd.f32 %v950_v57, %v949_v40  ;;  %v996_v45 = vrot.slane %v988_v44, 7  ;;  %v1026_v55 = vunpack.c.0.s8 %v1025_v53 }
 0x211   :  { %v926_v36 = vadd.f32 %v925_v38, %v924_v43  ;;  %v934_v60 = vrot.slane %v933_v58, 2  ;;  %v1028_v40 = vshrl.u32 %v1027_v54, 7  ;;  %vm1001_vm2 = vcmp.lt.f32.partialorder %v985_v52, %v993_v10 }
 0x212   :  { %v944_v39 = vadd.f32 %v943_v41, %v942_v56  ;;  %v952_v61 = vrot.slane %v951_v59, 2  ;;  %vm1002_vm3 = vcmp.lt.f32.partialorder %v986_v46, %v994_v42  ;;  %vm1003_vm4 = vcmp.lt.f32.partialorder %v987_v49, %v995_v13 }
 0x213   :  { %v927_v62 = vrot.slane %v926_v36, 1  ;;  %v935_v34 = vadd.f32 %v934_v60, %v933_v58  ;;  %vm1004_vm5 = vcmp.lt.f32.partialorder %v988_v44, %v996_v45  ;;  %v1172_v23 = vsel %vm1001_vm2, 1.0, %v1298_v27 }
 0x214   :  { %v945_v63 = vrot.slane %v944_v39, 1  ;;  %v953_v0 = vadd.f32 %v952_v61, %v951_v59  ;;  %v1173_v56 = vsel %vm1002_vm3, 1.0, %v1298_v27  ;;  %v1029_v57 = vsub.s32 %v1026_v55, %v1028_v40 }
 0x215   :  { %v928_v32 = vadd.f32 %v927_v62, %v926_v36  ;;  %v936_v35 = vrot.slane %v935_v34, 1  ;;  %v1174_v58 = vsel %vm1003_vm4, 1.0, %v1298_v27  ;;  %v1175_v41 = vsel %vm1004_vm5, 1.0, %v1298_v27 }
 0x216   :  { %v946_v1 = vadd.f32 %v945_v63, %v944_v39  ;;  %v954_v2 = vrot.slane %v953_v0, 1 }
 0x217   :  { %v957_v30 = vadd.f32 %v956_v37, %v928_v32  ;;  %v937_v33 = vadd.f32 %v936_v35, %v935_v34 }
 0x218   :  { %v959_v3 = vadd.f32 %v956_v37, %v946_v1  ;;  %v955_v4 = vadd.f32 %v954_v2, %v953_v0 }
 0x219   :  { %v961_v28 = vsub.f32 0.0, %v957_v30  ;;  %v958_v31 = vadd.f32 %v956_v37, %v937_v33 }
 0x21a   :  { %v963_v29 = vsub.f32 0.0, %v959_v3  ;;  %v960_v5 = vadd.f32 %v956_v37, %v955_v4 }
 0x21b   :  { %v965_v6 = vmul.f32 1.442695, %v961_v28  ;;  %v962_v7 = vsub.f32 0.0, %v958_v31 }
 0x21c   :  { %v969_v8 = vmul.f32 1.442695, %v963_v29  ;;  %v964_v9 = vsub.f32 0.0, %v960_v5 }
 0x21d   :  { %1281 = vpow2.f32 %v965_v6  ;;  %v967_v12 = vmul.f32 1.442695, %v962_v7 }
 0x21e   :  { %1283 = vpow2.f32 %v969_v8  ;;  %v971_v16 = vmul.f32 1.442695, %v964_v9 }
 0x21f   :  { %1285 = vpow2.f32 %v967_v12 }
 0x220   :  { %1287 = vpow2.f32 %v971_v16 }
 0x22a   :  { %v1282_v17 = vpop.eup %1281 }
 0x22b   :  { %v1284_v18 = vpop.eup %1283  ;;  %v973_v19 = vadd.f32 1.0, %v1282_v17 }
 0x22c   :  { %v1286_v20 = vpop.eup %1285  ;;  %v975_v21 = vadd.f32 1.0, %v1284_v18 }
 0x22d   :  { %v1288_v22 = vpop.eup %1287  ;;  %1289 = vrcp.f32 %v973_v19  ;;  %v974_v26 = vadd.f32 1.0, %v1286_v20 }
 0x22e   :  { %1291 = vrcp.f32 %v975_v21  ;;  %v976_v51 = vadd.f32 1.0, %v1288_v22 }
 0x22f   :  { %1293 = vrcp.f32 %v974_v26 }
 0x230   :  { %1295 = vrcp.f32 %v976_v51 }
 0x23a   :  { %v1290_v11 = vpop.eup %1289 }
 0x23b   :  { %v1292_v14 = vpop.eup %1291  ;;  %v1014_v59 = vsel %vm1013_vm6, %v1290_v11, %v1172_v23 }
 0x23c   :  { %v1294_v43 = vpop.eup %1293  ;;  %v1016_v60 = vsel %vm1013_vm6, %v1292_v14, %v1174_v58 }
 0x23d   :  { %v1296_v38 = vpop.eup %1295  ;;  %v1015_v36 = vsel %vm1013_vm6, %v1294_v43, %v1173_v56 }
 0x23e   :  { %v1022_v39 = vcombine.low %v1014_v59, %v1015_v36  ;;  %v1017_v61 = vsel %vm1013_vm6, %v1296_v38, %v1175_v41 }
 0x23f   :  { %v1023_v62 = vcombine.low %v1016_v60, %v1017_v61 }
 0x240   :  { %v1030_v34 = vrot.slane %v1022_v39, %v1029_v57 }
 0x241   :  { %v1037_v37 = vrot.slane %v1023_v62, %v1029_v57 }
 0x243   :  { %v1038_v63 = vcombine.low %v1030_v34, %v1037_v37 }
 0x245   :  { %1040 = vst [vmem:[#allocation3] sm:$0xff] %v1038_v63 }
 0x24c   :  { %v1059_v0 = vld [vmem:[#allocation3] sm:$0x3] }
 0x24d   :  { %1060 = vst [vmem:[%s1812_s7] sm:$0x3] %v1059_v0 }

</bundles_post_ra>
